<compile_context>
chip_gen: v7x
topology: tpu7x:2x2x1
jax: 0.10.0
libtpu: 0.0.40
codegen_flags: <defaults>
</compile_context>

<pallas_src>
import jax
import jax.numpy as jnp
from jax.experimental import pallas as pl
from jax.experimental.pallas import tpu as pltpu


# Padded feature sizes (lane multiples).
H1P = 128    # 15  -> 128
H2P = 256    # 150 -> 256
OUTP = 128   # 10  -> 128
IN_DIM = 784


def _round_up(x, m):
    return ((x + m - 1) // m) * m


def _pad_to(a, shape):
    pads = [(0, s - d) for d, s in zip(a.shape, shape)]
    return jnp.pad(a, pads)


def _mlp_kernel(x_ref, w1_ref, b1_ref, w2_ref, b2_ref, w3_ref, b3_ref, o_ref):
    # x_ref: (TB, 784) in the caller's dtype (usually f32); cast to bf16 here so
    # the wrapper never materializes an extra HBM pass over x.
    x = x_ref[...].astype(jnp.bfloat16)

    # Layer 1: bf16 x bf16 -> f32 accumulate (the only large-K matmul).
    h1 = jnp.dot(x, w1_ref[...], preferred_element_type=jnp.float32)
    h1 = jnp.maximum(h1 + b1_ref[...], 0.0)                    # (TB, 128) f32

    # Layers 2/3: bf16 operands, f32 accumulation; bias add / ReLU in f32.
    h2 = jnp.dot(h1.astype(jnp.bfloat16), w2_ref[...],
                 preferred_element_type=jnp.float32)
    h2 = jnp.maximum(h2 + b2_ref[...], 0.0)                    # (TB, 256) f32

    out = jnp.dot(h2.astype(jnp.bfloat16), w3_ref[...],
                  preferred_element_type=jnp.float32) + b3_ref[...]
    o_ref[...] = out.astype(o_ref.dtype)                       # (TB, 128) bf16, lane-dense


def mnist_med_forward(xb, params, tb=2048):
    """Forward pass matching the PyTorch Mnist_med module.

    xb: any array whose trailing elements flatten to 784 per row (e.g. (B,1,28,28)).
    params: padded params from init_params().
    """
    x = xb.reshape(-1, IN_DIM)
    B = x.shape[0]

    # Batch tile: multiple of 16 (bf16 sublane packing), no larger than needed,
    # and capped at ceil(B/2) so >=2 grid tiles feed both v7x TensorCores.
    tb = max(16, min(tb, _round_up(B, 16)))
    if B > 16:
        tb = min(tb, _round_up(pl.cdiv(B, 2), 16))
    grid = (pl.cdiv(B, tb),)

    # VMEM budget: 2x double-buffered x tiles + intermediates + headroom.
    x_tile_bytes = tb * IN_DIM * x.dtype.itemsize
    vmem_limit = int(min(100 * 2**20, max(32 * 2**20, 4 * x_tile_bytes + (16 << 20))))

    resident = lambda shape: pl.BlockSpec(shape, lambda i: (0,) * len(shape))

    out = pl.pallas_call(
        _mlp_kernel,
        out_shape=jax.ShapeDtypeStruct((B, OUTP), jnp.bfloat16),
        grid=grid,
        in_specs=[
            pl.BlockSpec((tb, IN_DIM), lambda i: (i, 0)),   # x: batch-tiled, double-buffered
            resident((IN_DIM, H1P)),                        # w1t (bf16)
            resident((1, H1P)),                             # b1  (f32)
            resident((H1P, H2P)),                           # w2t (bf16)
            resident((1, H2P)),                             # b2  (f32)
            resident((H2P, OUTP)),                          # w3t (bf16)
            resident((1, OUTP)),                            # b3  (f32)
        ],
        out_specs=pl.BlockSpec((tb, OUTP), lambda i: (i, 0)),
        compiler_params=pltpu.CompilerParams(
            dimension_semantics=("parallel",),
            vmem_limit_bytes=vmem_limit,
        ),
    )(x, params["w1t"], params["b1"], params["w2t"], params["b2"],
      params["w3t"], params["b3"])

    # Slice back to the 10 real classes; under jit this fuses with the consumer.
    return out[:, :10].astype(jnp.float32)


def init_params(key):
    """Deterministic init mirroring nn.Linear's default U(-1/sqrt(fan_in), 1/sqrt(fan_in)).

    Weights are stored pre-transposed (in_features, out_features) in bf16 and
    zero-padded to lane-dense shapes; biases are f32 and zero-padded so
    ReLU(0 + 0) = 0 in padded lanes.
    """
    def linear(key, fan_in, fan_out):
        kw, kb = jax.random.split(key)
        bound = 1.0 / jnp.sqrt(float(fan_in))
        w = jax.random.uniform(kw, (fan_out, fan_in), jnp.float32, -bound, bound)
        b = jax.random.uniform(kb, (fan_out,), jnp.float32, -bound, bound)
        return w, b

    k1, k2, k3 = jax.random.split(key, 3)
    w1, b1 = linear(k1, IN_DIM, 15)
    w2, b2 = linear(k2, 15, 150)
    w3, b3 = linear(k3, 150, 10)

    return {
        "w1t": _pad_to(w1.T, (IN_DIM, H1P)).astype(jnp.bfloat16),
        "b1": _pad_to(b1.reshape(1, -1), (1, H1P)),
        "w2t": _pad_to(w2.T, (H1P, H2P)).astype(jnp.bfloat16),
        "b2": _pad_to(b2.reshape(1, -1), (1, H2P)),
        "w3t": _pad_to(w3.T, (H2P, OUTP)).astype(jnp.bfloat16),
        "b3": _pad_to(b3.reshape(1, -1), (1, OUTP)),
    }


def _reference_forward(xb, params):
    # Same math in plain JAX, mirroring the kernel's bf16 operand / f32-accumulate
    # choices so the comparison measures kernel correctness, not bf16 quantization.
    x = xb.reshape(-1, IN_DIM).astype(jnp.bfloat16)
    h1 = jnp.dot(x, params["w1t"], preferred_element_type=jnp.float32)
    h1 = jnp.maximum(h1 + params["b1"], 0.0)
    h2 = jnp.dot(h1.astype(jnp.bfloat16), params["w2t"],
                 preferred_element_type=jnp.float32)
    h2 = jnp.maximum(h2 + params["b2"], 0.0)
    out = jnp.dot(h2.astype(jnp.bfloat16), params["w3t"],
                  preferred_element_type=jnp.float32) + params["b3"]
    return out.astype(jnp.bfloat16)[:, :10].astype(jnp.float32)


if __name__ == "__main__":
    key = jax.random.PRNGKey(0)
    kx, kp, kx2 = jax.random.split(key, 3)

    params = init_params(kp)

    # Small MNIST-like batch in NCHW: (B=2, C=1, H=28, W=28)
    xb = jax.random.normal(kx, (2, 1, 28, 28), jnp.float32)
    out = jax.block_until_ready(mnist_med_forward(xb, params))
    ref = _reference_forward(xb, params)
    assert out.shape == (2, 10)
    assert jnp.allclose(out, ref, atol=1e-2, rtol=1e-2)

    # Exercise the multi-tile grid + ragged tail path (B=300, tb=128 -> 3 tiles,
    # last tile covers only 44 valid rows; writeback of the rest is masked).
    xb2 = jax.random.normal(kx2, (300, 1, 28, 28), jnp.float32)
    out2 = jax.block_until_ready(mnist_med_forward(xb2, params, tb=128))
    ref2 = _reference_forward(xb2, params)
    assert out2.shape == (300, 10)
    assert jnp.allclose(out2, ref2, atol=1e-2, rtol=1e-2)

    print("KERNEL_OK")
</pallas_src>

<mosaic_0001>
module attributes {stable_mosaic.version = 11 : i64} {
  func.func @_mlp_kernel(%arg0: i32, %arg1: memref<16x784xf32, #tpu.memory_space<vmem>>, %arg2: memref<784x128xbf16, #tpu.memory_space<vmem>>, %arg3: memref<1x128xf32, #tpu.memory_space<vmem>>, %arg4: memref<128x256xbf16, #tpu.memory_space<vmem>>, %arg5: memref<1x256xf32, #tpu.memory_space<vmem>>, %arg6: memref<256x128xbf16, #tpu.memory_space<vmem>>, %arg7: memref<1x128xf32, #tpu.memory_space<vmem>>, %arg8: memref<16x128xbf16, #tpu.memory_space<vmem>>) attributes {dimension_semantics = [#tpu.dimension_semantics<parallel>], iteration_bounds = array<i64: 1>, scalar_prefetch = 0 : i64, scratch_operands = 0 : i64, tpu.core_type = #tpu.core_type<tc>, window_params = [{transform_indices = @transform_0, window_bounds = array<i64: 16, 784>}, {pipeline_mode = #tpu.pipeline_mode<synchronous>, transform_indices = @transform_1, window_bounds = array<i64: 784, 128>}, {pipeline_mode = #tpu.pipeline_mode<synchronous>, transform_indices = @transform_2, window_bounds = array<i64: 1, 128>}, {pipeline_mode = #tpu.pipeline_mode<synchronous>, transform_indices = @transform_3, window_bounds = array<i64: 128, 256>}, {pipeline_mode = #tpu.pipeline_mode<synchronous>, transform_indices = @transform_4, window_bounds = array<i64: 1, 256>}, {pipeline_mode = #tpu.pipeline_mode<synchronous>, transform_indices = @transform_5, window_bounds = array<i64: 256, 128>}, {pipeline_mode = #tpu.pipeline_mode<synchronous>, transform_indices = @transform_6, window_bounds = array<i64: 1, 128>}, {transform_indices = @transform_7, window_bounds = array<i64: 16, 128>}]} {
    %c0 = arith.constant 0 : index
    %c0_0 = arith.constant 0 : index
    %0 = vector.load %arg1[%c0, %c0_0] : memref<16x784xf32, #tpu.memory_space<vmem>>, vector<16x784xf32>
    %1 = arith.truncf %0 : vector<16x784xf32> to vector<16x784xbf16>
    %c0_1 = arith.constant 0 : index
    %c0_2 = arith.constant 0 : index
    %2 = vector.load %arg2[%c0_1, %c0_2] : memref<784x128xbf16, #tpu.memory_space<vmem>>, vector<784x128xbf16>
    %cst = arith.constant dense<0.000000e+00> : vector<16x128xf32>
    %3 = tpu.matmul %1, %2, %cst {dimension_numbers = #tpu.dot_dimension_numbers<[1], [0], [0], [1], [0, 0, 1, 1], [], []>} : vector<16x784xbf16>, vector<784x128xbf16>, vector<16x128xf32> -> vector<16x128xf32>
    %c0_3 = arith.constant 0 : index
    %c0_4 = arith.constant 0 : index
    %4 = vector.load %arg3[%c0_3, %c0_4] : memref<1x128xf32, #tpu.memory_space<vmem>>, vector<1x128xf32>
    %5 = vector.broadcast %4 : vector<1x128xf32> to vector<16x128xf32>
    %6 = arith.addf %3, %5 : vector<16x128xf32>
    %cst_5 = arith.constant 0.000000e+00 : f32
    %7 = vector.broadcast %cst_5 : f32 to vector<16x128xf32>
    %8 = arith.maximumf %6, %7 : vector<16x128xf32>
    %9 = arith.truncf %8 : vector<16x128xf32> to vector<16x128xbf16>
    %c0_6 = arith.constant 0 : index
    %c0_7 = arith.constant 0 : index
    %10 = vector.load %arg4[%c0_6, %c0_7] : memref<128x256xbf16, #tpu.memory_space<vmem>>, vector<128x256xbf16>
    %cst_8 = arith.constant dense<0.000000e+00> : vector<16x256xf32>
    %11 = tpu.matmul %9, %10, %cst_8 {dimension_numbers = #tpu.dot_dimension_numbers<[1], [0], [0], [1], [0, 0, 1, 1], [], []>} : vector<16x128xbf16>, vector<128x256xbf16>, vector<16x256xf32> -> vector<16x256xf32>
    %c0_9 = arith.constant 0 : index
    %c0_10 = arith.constant 0 : index
    %12 = vector.load %arg5[%c0_9, %c0_10] : memref<1x256xf32, #tpu.memory_space<vmem>>, vector<1x256xf32>
    %13 = vector.broadcast %12 : vector<1x256xf32> to vector<16x256xf32>
    %14 = arith.addf %11, %13 : vector<16x256xf32>
    %cst_11 = arith.constant 0.000000e+00 : f32
    %15 = vector.broadcast %cst_11 : f32 to vector<16x256xf32>
    %16 = arith.maximumf %14, %15 : vector<16x256xf32>
    %17 = arith.truncf %16 : vector<16x256xf32> to vector<16x256xbf16>
    %c0_12 = arith.constant 0 : index
    %c0_13 = arith.constant 0 : index
    %18 = vector.load %arg6[%c0_12, %c0_13] : memref<256x128xbf16, #tpu.memory_space<vmem>>, vector<256x128xbf16>
    %cst_14 = arith.constant dense<0.000000e+00> : vector<16x128xf32>
    %19 = tpu.matmul %17, %18, %cst_14 {dimension_numbers = #tpu.dot_dimension_numbers<[1], [0], [0], [1], [0, 0, 1, 1], [], []>} : vector<16x256xbf16>, vector<256x128xbf16>, vector<16x128xf32> -> vector<16x128xf32>
    %c0_15 = arith.constant 0 : index
    %c0_16 = arith.constant 0 : index
    %20 = vector.load %arg7[%c0_15, %c0_16] : memref<1x128xf32, #tpu.memory_space<vmem>>, vector<1x128xf32>
    %21 = vector.broadcast %20 : vector<1x128xf32> to vector<16x128xf32>
    %22 = arith.addf %19, %21 : vector<16x128xf32>
    %23 = arith.truncf %22 : vector<16x128xf32> to vector<16x128xbf16>
    %c0_17 = arith.constant 0 : index
    %c0_18 = arith.constant 0 : index
    %24 = vector.load %arg8[%c0_17, %c0_18] : memref<16x128xbf16, #tpu.memory_space<vmem>>, vector<16x128xbf16>
    tpu.vector_store %arg8[%c0_17, %c0_18], %23 {strides = array<i32>} : memref<16x128xbf16, #tpu.memory_space<vmem>>, vector<16x128xbf16>,
    return
  }
  func.func @transform_0(%arg0: i32) -> (i32, i32) {
    %c0_i32 = arith.constant 0 : i32
    %c0_i32_0 = arith.constant 0 : i32
    return %arg0, %c0_i32 : i32, i32
  }
  func.func @transform_1(%arg0: i32) -> (i32, i32) {
    %c0_i32 = arith.constant 0 : i32
    %c0_i32_0 = arith.constant 0 : i32
    %c0_i32_1 = arith.constant 0 : i32
    return %c0_i32, %c0_i32_0 : i32, i32
  }
  func.func @transform_2(%arg0: i32) -> (i32, i32) {
    %c0_i32 = arith.constant 0 : i32
    %c0_i32_0 = arith.constant 0 : i32
    %c0_i32_1 = arith.constant 0 : i32
    return %c0_i32, %c0_i32_0 : i32, i32
  }
  func.func @transform_3(%arg0: i32) -> (i32, i32) {
    %c0_i32 = arith.constant 0 : i32
    %c0_i32_0 = arith.constant 0 : i32
    %c0_i32_1 = arith.constant 0 : i32
    return %c0_i32, %c0_i32_0 : i32, i32
  }
  func.func @transform_4(%arg0: i32) -> (i32, i32) {
    %c0_i32 = arith.constant 0 : i32
    %c0_i32_0 = arith.constant 0 : i32
    %c0_i32_1 = arith.constant 0 : i32
    return %c0_i32, %c0_i32_0 : i32, i32
  }
  func.func @transform_5(%arg0: i32) -> (i32, i32) {
    %c0_i32 = arith.constant 0 : i32
    %c0_i32_0 = arith.constant 0 : i32
    %c0_i32_1 = arith.constant 0 : i32
    return %c0_i32, %c0_i32_0 : i32, i32
  }
  func.func @transform_6(%arg0: i32) -> (i32, i32) {
    %c0_i32 = arith.constant 0 : i32
    %c0_i32_0 = arith.constant 0 : i32
    %c0_i32_1 = arith.constant 0 : i32
    return %c0_i32, %c0_i32_0 : i32, i32
  }
  func.func @transform_7(%arg0: i32) -> (i32, i32) {
    %c0_i32 = arith.constant 0 : i32
    %c0_i32_0 = arith.constant 0 : i32
    return %arg0, %c0_i32 : i32, i32
  }
}

</mosaic_0001>

<bundles_post_ra>
// kernel: tpu_custom_call.1
= control target key start
LH: loop header
LB: loop body
LE: loop exit
PB: predicated region body
PF: predicated region fallthrough
CT: control target
= control target key end

     0   :  { %12 = vsyncpa [#allocation3], 0  ;;  %s1858_s0 = inlined_call_operand.hbm [shape: f32[2,784], index: 0, kind: input, shape index: {}]   ;;  %s1859_s1 = inlined_call_operand.hbm [shape: bf16[784,128], index: 1, kind: input, shape index: {}]   ;;  %s1860_s2 = inlined_call_operand.vmem [shape: f32[1,128], index: 2, kind: input, shape index: {}]   ;;  %s1861_s3 = inlined_call_operand.hbm [shape: bf16[128,256], index: 3, kind: input, shape index: {}]   ;;  %s1862_s4 = inlined_call_operand.vmem [shape: f32[1,256], index: 4, kind: input, shape index: {}]   ;;  %s1863_s5 = inlined_call_operand.hbm [shape: bf16[256,128], index: 5, kind: input, shape index: {}]   ;;  %s1864_s6 = inlined_call_operand.vmem [shape: f32[1,128], index: 6, kind: input, shape index: {}]   ;;  %s1865_s7 = inlined_call_operand.hbm [shape: bf16[2,128], index: 7, kind: output, shape index: {}]  }
   0x1   :  { %13 = vsyncpa [#allocation6], 0 }
   0x2   :  { %14 = vsyncpa [#allocation9], 0 }
   0x3   :  { %15 = vsyncpa [#allocation4], 0 }
   0x4   :  { %20 = vsyncadd [#allocation3], 1568  ;;  %s1701_s24 = smov [#allocation5]   ;;  %s1583_s28 = scalar_lea.hbm %s1859_s1, 6272 }
   0x5   :  { %s33_s25 = sshll.u32 %s1701_s24, 4  ;;  %p1584_p0 = scmp.ne.s32.totalorder %s1859_s1, %s1583_s28  ;;  %s34_s25 = int_to_ptr.vmem [resolvable:$true] %s33_s25 }
   0x6   :  { %p1587_p1 = scmp.lt.u32.totalorder %s1583_s28, %s1859_s1 }
   0x8   :  { %p1589_p2 = pnand %p1587_p1, %p1584_p0 }
   0xa   :  { %1592 = shalt.err (!%p1589_p2)
}
   0xb   :  { %s1593_s10 = scalar_lea.vmem %s34_s25, 6272  ;;  %p1598_p4 = scmp.lt.s32.totalorder %s34_s25, %s34_s25 }
   0xc   :  { %p1594_p3 = scmp.ne.s32.totalorder %s34_s25, %s1593_s10  ;;  %p1599_p5 = scmp.lt.s32.totalorder %s1593_s10, %s1593_s10 }
   0xe   :  { %p1600_p6 = por %p1599_p5, %p1598_p4 }
  0x10   :  { %p1601_p7 = pnand %p1600_p6, %p1594_p3 }
  0x12   :  { %1604 = shalt.err (!%p1601_p7)
}
  0x13   :  { %s1702_s11 = smov 64   ;;  %s1703_s12 = smov 4  }
  0x14   :  { %39 = dma.hbm_to_vmem [thread:$0]  %s1859_s1, 6272, %s34_s25, [#allocation6], %s1702_s11, %s1702_s11, %s1703_s12  }
  0x15   :  { %s1704_s15 = smov [#allocation2]   ;;  %s1605_s19 = scalar_lea.hbm %s1858_s0, 224 }
  0x16   :  { %s21_s16 = sshll.u32 %s1704_s15, 4  ;;  %p1606_p8 = scmp.ne.s32.totalorder %s1858_s0, %s1605_s19  ;;  %s22_s16 = int_to_ptr.vmem [resolvable:$true] %s21_s16 }
  0x17   :  { %p1609_p9 = scmp.lt.u32.totalorder %s1605_s19, %s1858_s0 }
  0x19   :  { %p1611_p10 = pnand %p1609_p9, %p1606_p8 }
  0x1b   :  { %1614 = shalt.err (!%p1611_p10)
}
  0x1c   :  { %s1615_s24 = scalar_lea.vmem %s22_s16, 224  ;;  %s1619_s1 = scalar_lea.vmem %s22_s16, 1792 }
  0x1d   :  { %p1616_p11 = scmp.ne.s32.totalorder %s22_s16, %s1615_s24  ;;  %p1620_p12 = scmp.lt.s32.totalorder %s22_s16, %s22_s16 }
  0x1e   :  { %p1621_p13 = scmp.lt.s32.totalorder %s1619_s1, %s1615_s24 }
  0x20   :  { %p1622_p0 = por %p1621_p13, %p1620_p12 }
  0x22   :  { %p1623_p1 = pnand %p1622_p0, %p1616_p11 }
  0x24   :  { %1626 = shalt.err (!%p1623_p1)
}
  0x25   :  { %s1705_s25 = smov 224   ;;  %s1706_s26 = smov 14  }
  0x26   :  { %27 = dma.hbm_to_vmem [thread:$0]  %s1858_s0, 224, %s22_s16, [#allocation3], %s1705_s25, %s1705_s25, %s1706_s26  }
  0x27   :  { %s1707_s29 = smov [#allocation7]   ;;  %s1627_s10 = scalar_lea.hbm %s1861_s3, 2048 }
  0x28   :  { %s47_s30 = sshll.u32 %s1707_s29, 4  ;;  %p1628_p2 = scmp.ne.s32.totalorder %s1861_s3, %s1627_s10  ;;  %s48_s30 = int_to_ptr.vmem [resolvable:$true] %s47_s30 }
  0x29   :  { %p1631_p3 = scmp.lt.u32.totalorder %s1627_s10, %s1861_s3 }
  0x2b   :  { %p1633_p4 = pnand %p1631_p3, %p1628_p2 }
  0x2d   :  { %1636 = shalt.err (!%p1633_p4)
}
  0x2e   :  { %s1637_s18 = scalar_lea.vmem %s48_s30, 2048  ;;  %p1642_p6 = scmp.lt.s32.totalorder %s48_s30, %s48_s30 }
  0x2f   :  { %p1638_p5 = scmp.ne.s32.totalorder %s48_s30, %s1637_s18  ;;  %p1643_p7 = scmp.lt.s32.totalorder %s1637_s18, %s1637_s18 }
  0x31   :  { %p1644_p8 = por %p1643_p7, %p1642_p6 }
  0x33   :  { %p1645_p9 = pnand %p1644_p8, %p1638_p5 }
  0x35   :  { %1648 = shalt.err (!%p1645_p9)
}
  0x36   :  { %s1708_s0 = smov 128   ;;  %s1709_s16 = smov 8  }
  0x37   :  { %53 = dma.hbm_to_vmem [thread:$0]  %s1861_s3, 2048, %s48_s30, [#allocation6], %s1708_s0, %s1708_s0, %s1709_s16  }
  0x38   :  { %s1710_s21 = smov [#allocation8]   ;;  %s1649_s1 = scalar_lea.hbm %s1863_s5, 2048 }
  0x39   :  { %s61_s22 = sshll.u32 %s1710_s21, 4  ;;  %p1650_p10 = scmp.ne.s32.totalorder %s1863_s5, %s1649_s1  ;;  %s62_s22 = int_to_ptr.vmem [resolvable:$true] %s61_s22 }
  0x3a   :  { %p1653_p11 = scmp.lt.u32.totalorder %s1649_s1, %s1863_s5 }
  0x3c   :  { %p1655_p12 = pnand %p1653_p11, %p1650_p10 }
  0x3e   :  { %1658 = shalt.err (!%p1655_p12)
}
  0x3f   :  { %s1659_s29 = scalar_lea.vmem %s62_s22, 2048  ;;  %p1664_p0 = scmp.lt.s32.totalorder %s62_s22, %s62_s22 }
  0x40   :  { %p1660_p13 = scmp.ne.s32.totalorder %s62_s22, %s1659_s29  ;;  %p1665_p1 = scmp.lt.s32.totalorder %s1659_s29, %s1659_s29 }
  0x42   :  { %p1666_p2 = por %p1665_p1, %p1664_p0 }
  0x44   :  { %p1667_p3 = pnand %p1666_p2, %p1660_p13 }
  0x46   :  { %1670 = shalt.err (!%p1667_p3)
}
  0x47   :  { %67 = dma.hbm_to_vmem [thread:$0]  %s1863_s5, 2048, %s62_s22, [#allocation9], %s1702_s11, %s1702_s11, %s1703_s12  }
  0x48   :  { %1693 = dma.done.wait [#allocation3], 1792  }
  0x49   :  { %1694 = vsyncadd [#allocation3], 4294965504 }
  0x4a   :  { %1695 = dma.done.wait [#allocation6], 8320  }
  0x4b   :  { %1696 = vsyncadd [#allocation6], 4294958976 }
  0x4c   :  { %1697 = dma.done.wait [#allocation9], 2048  }
  0x4d   :  { %1698 = vsyncadd [#allocation9], 4294965248  ;;  %v1470_v0 = vld [vmem:[#allocation5 + $0x40] sm:$0xff]   ;;  %v1474_v4 = vld [vmem:[#allocation5 + $0x48] sm:$0xff]   ;;  %v1711_v24 = vmov 1983009808   ;;  %v122_v26 = vlaneseq }
  0x4e   :  { %v1471_v1 = vld [vmem:[#allocation5] sm:$0xff]   ;;  %1356 = vmatprep.subr.bf16.mxu0 %v1470_v0  ;;  %v1475_v5 = vld [vmem:[#allocation5 + $0x8] sm:$0xff]   ;;  %v1478_v8 = vld [vmem:[#allocation5 + $0x50] sm:$0xff]   ;;  %v120_v25 = vunpack.c.l.s4 %v1711_v24  ;;  %v1712_v58 = vmov 0.0   ;;  %vm1713_vm0 = vmmov 0   ;;  %vm677_vm1 = vcmask 130048  }
  0x4f   :  { %v1472_v2 = vld [vmem:[#allocation5 + $0xc0] sm:$0xff]   ;;  %1357 = vmatpush3.bf16.msra.mxu0 %v1471_v1  ;;  %v1476_v6 = vld [vmem:[#allocation5 + $0xc8] sm:$0xff]   ;;  %v1479_v9 = vld [vmem:[#allocation5 + $0x10] sm:$0xff]   ;;  %v1813_v32 = vshrl.u32 %v122_v26, 7 }
  0x50   :  { %v1473_v3 = vld [vmem:[#allocation5 + $0x80] sm:$0xff]   ;;  %1378 = vmatprep.subr.bf16.mxu1 %v1472_v2  ;;  %1358 = vmatprep.subr.bf16.mxu0 %v1474_v4  ;;  %v1477_v7 = vld [vmem:[#allocation5 + $0x88] sm:$0xff]   ;;  %v1480_v10 = vld [vmem:[#allocation5 + $0xd0] sm:$0xff]   ;;  %v121_v31 = vunpack.c.0.s8 %v120_v25 }
  0x51   :  { %1379 = vmatpush3.bf16.msra.mxu1 %v1473_v3  ;;  %v1481_v11 = vld [vmem:[#allocation5 + $0x90] sm:$0xff]   ;;  %v1482_v12 = vld [vmem:[#allocation5 + $0x58] sm:$0xff]   ;;  %v1486_v16 = vld [vmem:[#allocation5 + $0x60] sm:$0xff]  }
  0x52   :  { %1380 = vmatprep.subr.bf16.mxu1 %v1476_v6  ;;  %v1483_v13 = vld [vmem:[#allocation5 + $0x18] sm:$0xff]   ;;  %v1487_v17 = vld [vmem:[#allocation5 + $0x20] sm:$0xff]   ;;  %v1490_v20 = vld [vmem:[#allocation5 + $0x68] sm:$0xff]   ;;  %v1816_v36 = vsub.s32 %v121_v31, %v1813_v32 }
  0x53   :  { %1359 = vmatpush3.bf16.msra.mxu0 %v1475_v5  ;;  %v1484_v14 = vld [vmem:[#allocation5 + $0xd8] sm:$0xff]   ;;  %v1488_v18 = vld [vmem:[#allocation5 + $0xe0] sm:$0xff]   ;;  %v1491_v21 = vld [vmem:[#allocation5 + $0x28] sm:$0xff]  }
  0x54   :  { %1360 = vmatprep.subr.bf16.mxu0 %v1478_v8  ;;  %v1485_v15 = vld [vmem:[#allocation5 + $0x98] sm:$0xff]   ;;  %v1489_v19 = vld [vmem:[#allocation5 + $0xa0] sm:$0xff]   ;;  %v1492_v22 = vld [vmem:[#allocation5 + $0xe8] sm:$0xff]  }
  0x55   :  { %1381 = vmatpush3.bf16.msra.mxu1 %v1477_v7  ;;  %v1493_v23 = vld [vmem:[#allocation5 + $0xa8] sm:$0xff]   ;;  %v1494_v27 = vld [vmem:[#allocation5 + $0x70] sm:$0xff]   ;;  %v1498_v33 = vld [vmem:[#allocation5 + $0x78] sm:$0xff]  }
  0x56   :  { %1382 = vmatprep.subr.bf16.mxu1 %v1480_v10  ;;  %v1495_v28 = vld [vmem:[#allocation5 + $0x30] sm:$0xff]   ;;  %v1499_v34 = vld [vmem:[#allocation5 + $0x38] sm:$0xff]   ;;  %v1510_v46 = vld [vmem:[#allocation5 + $0x140] sm:$0xff]  }
  0x57   :  { %1361 = vmatpush3.bf16.msra.mxu0 %v1479_v9  ;;  %v1496_v29 = vld [vmem:[#allocation5 + $0xf0] sm:$0xff]   ;;  %v1500_v35 = vld [vmem:[#allocation5 + $0xf8] sm:$0xff]   ;;  %v1515_v62 = vld [vmem:[#allocation5 + $0x100] sm:$0xff]  }
  0x58   :  { %1362 = vmatprep.subr.bf16.mxu0 %v1482_v12  ;;  %v1497_v30 = vld [vmem:[#allocation5 + $0xb0] sm:$0xff]   ;;  %v1503_v38 = vld [vmem:[#allocation2 + $0x1c] ss:$14 sps:$4 sm:$0xff]   ;;  %v1523_v12 = vld [vmem:[#allocation5 + $0x120] sm:$0xff]  }
  0x59   :  { %1383 = vmatpush3.bf16.msra.mxu1 %v1481_v11  ;;  %v1501_v37 = vld [vmem:[#allocation2] ss:$14 sps:$4 sm:$0xff]   ;;  %v1505_v39 = vld [vmem:[#allocation2 + $0x38] ss:$14 sps:$4 sm:$0xff]   ;;  %v139_v43 = vrot.slane %v1503_v38, %v1816_v36  ;;  %v1513_v49 = vld [vmem:[#allocation2 + $0x3c] ss:$14 sps:$4 sm:$0xff]  }
  0x5a   :  { %1384 = vmatprep.subr.bf16.mxu1 %v1484_v14  ;;  %v1507_v40 = vld [vmem:[#allocation2 + $0x54] ss:$14 sps:$4 sm:$0xff]   ;;  %v125_v41 = vrot.slane %v1501_v37, %v1816_v36  ;;  %v1509_v42 = vld [vmem:[#allocation5 + $0xb8] sm:$0xff]   ;;  %v196_v44 = vrot.slane %v1505_v39, %v1816_v36  ;;  %v203_v57 = vrot.slane %v1513_v49, %v1816_v36  ;;  %v1516_v1 = vld [vmem:[#allocation5 + $0x148] sm:$0xff]  }
  0x5b   :  { %1363 = vmatpush3.bf16.msra.mxu0 %v1483_v13  ;;  %v210_v45 = vrot.slane %v1507_v40, %v1816_v36  ;;  %v1511_v47 = vld [vmem:[#allocation2 + $0x4] ss:$14 sps:$4 sm:$0xff]   ;;  %v1512_v48 = vld [vmem:[#allocation2 + $0x20] ss:$14 sps:$4 sm:$0xff]   ;;  %v1517_v6 = vld [vmem:[#allocation5 + $0x108] sm:$0xff]  }
  0x5c   :  { %1364 = vmatprep.subr.bf16.mxu0 %v1486_v16  ;;  %v148_v50 = vcombine.high %v125_v41, %v139_v43  ;;  %v147_v52 = vcombine.low %v125_v41, %v139_v43  ;;  %v1514_v54 = vld [vmem:[#allocation2 + $0x58] ss:$14 sps:$4 sm:$0xff]   ;;  %v132_v55 = vrot.slane %v1511_v47, %v1816_v36  ;;  %v146_v56 = vrot.slane %v1512_v48, %v1816_v36  ;;  %v1522_v11 = vld [vmem:[#allocation5 + $0x160] sm:$0xff]  }
  0x5d   :  { %1385 = vmatpush3.bf16.msra.mxu1 %v1485_v15  ;;  %v219_v51 = vcombine.high %v196_v44, %v210_v45  ;;  %v218_v53 = vcombine.low %v196_v44, %v210_v45  ;;  %v217_v61 = vrot.slane %v1514_v54, %v1816_v36  ;;  %v1518_v7 = vld [vmem:[#allocation5 + $0x150] sm:$0xff]   ;;  %v1520_v9 = vld [vmem:[#allocation5 + $0x158] sm:$0xff]   ;;  %v1530_v13 = vld [vmem:[#allocation5 + $0x180] sm:$0xff]  }
  0x5e   :  { %1386 = vmatprep.subr.bf16.mxu1 %v1488_v18  ;;  %v150_v63 = vcombine.high %v132_v55, %v146_v56  ;;  %v149_v0 = vcombine.low %v132_v55, %v146_v56  ;;  %v1519_v8 = vld [vmem:[#allocation5 + $0x110] sm:$0xff]   ;;  %v1521_v10 = vld [vmem:[#allocation5 + $0x118] sm:$0xff]   ;;  %v1524_v14 = vld [vmem:[#allocation5 + $0x168] sm:$0xff]  }
  0x5f   :  { %1365 = vmatpush3.bf16.msra.mxu0 %v1487_v17  ;;  %v272_v59 = vpack.c.bf16 %v219_v51, %v148_v50  ;;  %v271_v60 = vpack.c.bf16 %v218_v53, %v147_v52  ;;  %v221_v2 = vcombine.high %v203_v57, %v217_v61  ;;  %v220_v3 = vcombine.low %v203_v57, %v217_v61  ;;  %v1531_v15 = vld [vmem:[#allocation2 + $0x8] ss:$14 sps:$4 sm:$0xff]   ;;  %v1533_v16 = vld [vmem:[#allocation2 + $0xc] ss:$14 sps:$4 sm:$0x33]   ;;  %v1527_v31 = vld [vmem:[#allocation5 + $0x130] sm:$0xff]  }
  0x60   :  { %1366 = vmatprep.subr.bf16.mxu0 %v1490_v20  ;;  %v1525_v17 = vld [vmem:[#allocation5 + $0x128] sm:$0xff]   ;;  %v1534_v18 = vld [vmem:[#allocation2 + $0x24] ss:$14 sps:$4 sm:$0xff]   ;;  %v1528_v37 = vld [vmem:[#allocation5 + $0x178] sm:$0xff]  }
  0x61   :  { %1387 = vmatpush3.bf16.msra.mxu1 %v1489_v19  ;;  %713 = vmatprep.mubr.bf16.mxu0 %v272_v59  ;;  %v274_v4 = vpack.c.bf16 %v221_v2, %v150_v63  ;;  %v273_v5 = vpack.c.bf16 %v220_v3, %v149_v0  ;;  %v1536_v19 = vld [vmem:[#allocation2 + $0x28] ss:$14 sps:$4 sm:$0x33]   ;;  %v1526_v20 = vld [vmem:[#allocation5 + $0x170] sm:$0xff]   ;;  %v175_v25 = vrot.slane %v1534_v18, %v1816_v36  ;;  %v1567_v63 = vld [vmem:[#allocation8 + $0x40] sm:$0xff]  }
  0x62   :  { %1388 = vmatprep.subr.bf16.mxu1 %v1492_v22  ;;  %v168_v22 = vrot.slane %v1533_v16, %v1816_v36  ;;  %v1539_v24 = vld [vmem:[#allocation2 + $0x44] ss:$14 sps:$4 sm:$0x33]   ;;  %v182_v26 = vrot.slane %v1536_v19, %v1816_v36  ;;  %v1529_v41 = vld [vmem:[#allocation5 + $0x138] sm:$0xff]   ;;  %v1549_v51 = vld [vmem:[#allocation7 + $0x20] ss:$8 sps:$4 sm:$0xff]  }
  0x63   :  { %1367 = vmatpush3.bf16.msra.mxu0 %v1491_v21  ;;  %754 = vmatprep.mubr.bf16.mxu1 %v274_v4  ;;  %v161_v21 = vrot.slane %v1531_v15, %v1816_v36  ;;  %v1545_v47 = vld [vmem:[#allocation7 + $0x4] ss:$8 sps:$4 sm:$0xff]   ;;  %v1548_v48 = vld [vmem:[#allocation7 + $0x14] ss:$8 sps:$4 sm:$0xff]   ;;  %v1546_v49 = vld [vmem:[#allocation7 + $0x10] ss:$8 sps:$4 sm:$0xff]  }
  0x64   :  { %1368 = vmatprep.subr.bf16.mxu0 %v1494_v27  ;;  %v1540_v27 = vld [vmem:[#allocation2 + $0x5c] ss:$14 sps:$4 sm:$0xff]   ;;  %v185_v38 = vcombine.low %v168_v22, %v182_v26  ;;  %v1555_v55 = vld [vmem:[#allocation7 + $0x40] ss:$8 sps:$4 sm:$0xff]  }
  0x65   :  { %1389 = vmatpush3.bf16.msra.mxu1 %v1493_v23  ;;  %v1537_v23 = vld [vmem:[#allocation2 + $0x40] ss:$14 sps:$4 sm:$0xff]   ;;  %v183_v44 = vcombine.low %v161_v21, %v175_v25  ;;  %v1551_v50 = vld [vmem:[#allocation7 + $0x24] ss:$8 sps:$4 sm:$0xff]  }
  0x66   :  { %1390 = vmatprep.subr.bf16.mxu1 %v1496_v29  ;;  %v232_v29 = vrot.slane %v1537_v23, %v1816_v36  ;;  %v1554_v52 = vld [vmem:[#allocation7 + $0x34] ss:$8 sps:$4 sm:$0xff]   ;;  %v1552_v53 = vld [vmem:[#allocation7 + $0x30] ss:$8 sps:$4 sm:$0xff]   ;;  %v1557_v54 = vld [vmem:[#allocation7 + $0x44] ss:$8 sps:$4 sm:$0xff]  }
  0x67   :  { %1369 = vmatpush3.bf16.msra.mxu0 %v1495_v28  ;;  %v1542_v28 = vld [vmem:[#allocation2 + $0x60] ss:$14 sps:$4 sm:$0x33]   ;;  %v1558_v57 = vld [vmem:[#allocation7 + $0x50] ss:$8 sps:$4 sm:$0xff]   ;;  %v1568_v0 = vld [vmem:[#allocation8] sm:$0xff]  }
  0x68   :  { %1370 = vmatprep.subr.bf16.mxu0 %v1498_v33  ;;  %v184_v33 = vcombine.high %v161_v21, %v175_v25  ;;  %v1560_v56 = vld [vmem:[#allocation7 + $0x54] ss:$8 sps:$4 sm:$0xff]   ;;  %v1561_v59 = vld [vmem:[#allocation7 + $0x60] ss:$8 sps:$4 sm:$0xff]   ;;  %v1564_v61 = vld [vmem:[#allocation7 + $0x70] ss:$8 sps:$4 sm:$0xff]  }
  0x69   :  { %1391 = vmatpush3.bf16.msra.mxu1 %v1497_v30  ;;  %v239_v30 = vrot.slane %v1539_v24, %v1816_v36  ;;  %v1570_v2 = vld [vmem:[#allocation8 + $0x8] sm:$0xff]   ;;  %v1571_v3 = vld [vmem:[#allocation8 + $0x50] sm:$0xff]  }
  0x6a   :  { %1392 = vmatprep.subr.bf16.mxu1 %v1500_v35  ;;  %v253_v35 = vrot.slane %v1542_v28, %v1816_v36  ;;  %v1572_v4 = vld [vmem:[#allocation8 + $0x10] sm:$0xff]  }
  0x6b   :  { %1371 = vmatpush3.bf16.msra.mxu0 %v1499_v34  ;;  %v246_v34 = vrot.slane %v1540_v27, %v1816_v36  ;;  %v1543_v36 = vld [vmem:[#allocation7] ss:$8 sps:$4 sm:$0xff]  }
  0x6c   :  { %1400 = vmatprep.subr.bf16.mxu0 %v1510_v46  ;;  %v256_v40 = vcombine.low %v239_v30, %v253_v35 }
  0x6d   :  { %1393 = vmatpush3.bf16.msra.mxu1 %v1509_v42  ;;  %v255_v39 = vcombine.high %v232_v29, %v246_v34  ;;  %v254_v45 = vcombine.low %v232_v29, %v246_v34 }
  0x6e   :  { %1446 = vmatprep.subr.bf16.mxu1 %v1712_v58  ;;  %714 = vmatmul.mubr.bf16.vlgmr.msra.gmra.mrb[0].mxu0 %v271_v60  ;;  %v277_v43 = vpack.c.bf16 %v256_v40, %v185_v38  ;;  %v1566_v60 = vld [vmem:[#allocation7 + $0x74] ss:$8 sps:$4 sm:$0xff]  }
  0x6f   :  { %1401 = vmatpush3.bf16.msra.mxu0 %v1515_v62  ;;  %v276_v42 = vpack.c.bf16 %v255_v39, %v184_v33  ;;  %v275_v46 = vpack.c.bf16 %v254_v45, %v183_v44  ;;  %v1714_v62 = vmov 0  }
  0x70   :  { %1402 = vmatprep.subr.bf16.mxu0 %v1516_v1  ;;  %755 = vmatmul.mubr.bf16.vlgmr.msra.gmra.mrb[0].mxu1 %v273_v5  ;;  %v1569_v1 = vld [vmem:[#allocation8 + $0x48] sm:$0xff]   ;;  %v1573_v5 = vld [vmem:[#allocation8 + $0x58] sm:$0xff]  }
  0x71   :  { %1448 = vmatprep.mubr.msk.bf16.mxu1 %vm1713_vm0, %v1712_v58  ;;  %1447 = vmatpush3.bf16.msra.mxu1 %v1530_v13  ;;  %v1563_v58 = vld [vmem:[#allocation7 + $0x64] ss:$8 sps:$4 sm:$0xff]  }
  0x72   :  { %795 = vmatprep.mubr.bf16.mxu0 %v276_v42  ;;  %956 = vmatprep.subr.bf16.mxu1 %v1545_v47  ;;  %v1580_v47 = vld [vmem:[#allocation8 + $0x30] sm:$0xff]  }
  0x73   :  { %1403 = vmatpush3.bf16.msra.mxu0 %v1517_v6  ;;  %v1574_v6 = vld [vmem:[#allocation8 + $0x18] sm:$0xff]  }
  0x74   :  { %1404 = vmatprep.subr.bf16.mxu0 %v1518_v7  ;;  %v1575_v7 = vld [vmem:[#allocation8 + $0x60] sm:$0xff]  }
  0x77   :  { %1405 = vmatpush3.bf16.msra.mxu0 %v1519_v8  ;;  %v1576_v8 = vld [vmem:[#allocation8 + $0x20] sm:$0xff]  }
  0x78   :  { %1406 = vmatprep.subr.bf16.mxu0 %v1520_v9  ;;  %1449 = vmatmul.mubr.msk.bf16.vlgmr.msra.gmra.mrb[4].mxu1 %vm677_vm1, %v277_v43  ;;  %v1577_v9 = vld [vmem:[#allocation8 + $0x68] sm:$0xff]  }
  0x79   :  { %957 = vmatpush1.bf16.msra.mxu1 %v1543_v36  ;;  %988 = vmatprep.mubr.bf16.mxu1 %v1714_v62  ;;  %v1579_v36 = vld [vmem:[#allocation8 + $0x70] sm:$0xff]  }
  0x7a   :  { %958 = vmatprep.subr.bf16.mxu1 %v1548_v48  ;;  %v1581_v48 = vld [vmem:[#allocation8 + $0x78] sm:$0xff]  }
  0x7b   :  { %1407 = vmatpush3.bf16.msra.mxu0 %v1521_v10 }
  0x7c   :  { %1408 = vmatprep.subr.bf16.mxu0 %v1522_v11  ;;  %v1267_v11 = vld [vmem:[%s1860_s2] ss:$0 sm:$0xff] }
  0x7d   :  { %959 = vmatpush1.bf16.msra.mxu1 %v1546_v49  ;;  %v1582_v49 = vld [vmem:[#allocation8 + $0x38] sm:$0xff]  }
  0x7e   :  { %960 = vmatprep.subr.bf16.mxu1 %v1551_v50  ;;  %v868_v50 = vsub.s32 0, %v1813_v32 }
  0x7f   :  { %1409 = vmatpush3.bf16.msra.mxu0 %v1523_v12 }
  0x80   :  { %1410 = vmatprep.subr.bf16.mxu0 %v1524_v14 }
  0x81   :  { %961 = vmatpush1.bf16.msra.mxu1 %v1549_v51  ;;  %v864_v51 = vld [vmem:[%s1862_s4] sm:$0x3] }
  0x82   :  { %962 = vmatprep.subr.bf16.mxu1 %v1554_v52  ;;  %v872_v52 = vsub.s32 1, %v1813_v32 }
  0x83   :  { %1411 = vmatpush3.bf16.msra.mxu0 %v1525_v17 }
  0x84   :  { %1412 = vmatprep.subr.bf16.mxu0 %v1526_v20 }
  0x85   :  { %963 = vmatpush1.bf16.msra.mxu1 %v1552_v53  ;;  %v869_v53 = vrot.slane %v864_v51, %v868_v50 }
  0x86   :  { %964 = vmatprep.subr.bf16.mxu1 %v1557_v54  ;;  %v873_v54 = vrot.slane %v864_v51, %v872_v52 }
  0x87   :  { %1413 = vmatpush3.bf16.msra.mxu0 %v1527_v31 }
  0x88   :  { %1414 = vmatprep.subr.bf16.mxu0 %v1528_v37 }
  0x89   :  { %965 = vmatpush1.bf16.msra.mxu1 %v1555_v55 }
  0x8a   :  { %966 = vmatprep.subr.bf16.mxu1 %v1560_v56 }
  0x8b   :  { %1415 = vmatpush3.bf16.msra.mxu0 %v1529_v41 }
  0x8c   :  { %1424 = vmatprep.subr.bf16.mxu0 %v1567_v63 }
  0x8d   :  { %967 = vmatpush1.bf16.msra.mxu1 %v1558_v57 }
  0x8e   :  { %796 = vmatmul.mubr.bf16.vlgmr.msra.gmra.mrb[4].mxu0 %v275_v46  ;;  %968 = vmatprep.subr.bf16.mxu1 %v1563_v58  ;;  %v1578_v46 = vld [vmem:[#allocation8 + $0x28] sm:$0xff]  }
  0x8f   :  { %1425 = vmatpush3.bf16.msra.mxu0 %v1568_v0 }
  0x90   :  { %1426 = vmatprep.subr.bf16.mxu0 %v1569_v1 }
  0x91   :  { %969 = vmatpush1.bf16.msra.mxu1 %v1561_v59 }
  0x92   :  { %970 = vmatprep.subr.bf16.mxu1 %v1566_v60 }
  0x93   :  { %1427 = vmatpush3.bf16.msra.mxu0 %v1570_v2 }
  0x94   :  { %1428 = vmatprep.subr.bf16.mxu0 %v1571_v3 }
  0x95   :  { %971 = vmatpush1.bf16.msra.mxu1 %v1564_v61 }
  0x97   :  { %1429 = vmatpush3.bf16.msra.mxu0 %v1572_v4 }
  0x98   :  { %1430 = vmatprep.subr.bf16.mxu0 %v1573_v5  ;;  %v1715_v5 = vmov 1966171168  }
  0x9b   :  { %1431 = vmatpush3.bf16.msra.mxu0 %v1574_v6  ;;  %v1185_v6 = vunpack.c.l.s4 %v1715_v5 }
  0x9c   :  { %1432 = vmatprep.subr.bf16.mxu0 %v1575_v7 }
  0x9f   :  { %1433 = vmatpush3.bf16.msra.mxu0 %v1576_v8 }
  0xa0   :  { %1434 = vmatprep.subr.bf16.mxu0 %v1577_v9 }
  0xa3   :  { %1435 = vmatpush3.bf16.msra.mxu0 %v1578_v46 }
  0xa4   :  { %1436 = vmatprep.subr.bf16.mxu0 %v1579_v36 }
  0xa7   :  { %1437 = vmatpush3.bf16.msra.mxu0 %v1580_v47 }
  0xa8   :  { %1438 = vmatprep.subr.bf16.mxu0 %v1581_v48 }
  0xab   :  { %1439 = vmatpush3.bf16.msra.mxu0 %v1582_v49 }
 0x141   :  { %v1372_v10 = vpop.f32.mrb[0].mxu0 }
 0x142   :  { %v1373_v12 = vpop.f32.mrb[1].mxu0 }
 0x143   :  { %v1374_v13 = vadd.f32 %v1373_v12, %v1372_v10  ;;  %v1375_v14 = vpop.f32.mrb[2].mxu0  ;;  %v1394_v17 = vpop.f32.mrb[0].mxu1  ;;  %v1334_v12 = vld [vmem:[%s1864_s6] ss:$0 sm:$0xff] }
 0x144   :  { %v1376_v15 = vpop.f32.mrb[3].mxu0  ;;  %v1395_v19 = vpop.f32.mrb[1].mxu1 }
 0x145   :  { %v716_v16 = vadd.f32 %v1374_v13, %v1267_v11  ;;  %v1377_v18 = vadd.f32 %v1376_v15, %v1375_v14  ;;  %v1396_v21 = vadd.f32 %v1395_v19, %v1394_v17  ;;  %v1397_v22 = vpop.f32.mrb[2].mxu1 }
 0x146   :  { %v1398_v23 = vpop.f32.mrb[3].mxu1 }
 0x147   :  { %v719_v20 = vadd.f32 %v1377_v18, %v1267_v11  ;;  %v757_v24 = vadd.f32 %v1396_v21, %v716_v16  ;;  %v1399_v25 = vadd.f32 %v1398_v23, %v1397_v22  ;;  %v1186_v11 = vunpack.c.0.s8 %v1185_v6 }
 0x149   :  { %v760_v26 = vadd.f32 %v1399_v25, %v719_v20  ;;  %v1189_v17 = vsub.s32 %v1186_v11, %v1813_v32 }
 0x14b   :  { %v838_v27 = vpop.f32.mrb[4].mxu1 }
 0x14c   :  { %v1450_v28 = vpop.f32.mrb[5].mxu1 }
 0x14d   :  { %v841_v29 = vpop.f32.mrb[6].mxu1 }
 0x14e   :  { %v1451_v30 = vpop.f32.mrb[7].mxu1 }
 0x161   :  { %v1416_v31 = vpop.f32.mrb[4].mxu0 }
 0x162   :  { %v1417_v33 = vpop.f32.mrb[5].mxu0 }
 0x163   :  { %v1418_v34 = vadd.f32 %v1417_v33, %v1416_v31  ;;  %v1419_v35 = vpop.f32.mrb[6].mxu0 }
 0x164   :  { %v1420_v37 = vpop.f32.mrb[7].mxu0 }
 0x165   :  { %v798_v38 = vadd.f32 %v1418_v34, %v757_v24  ;;  %v1421_v39 = vadd.f32 %v1420_v37, %v1419_v35 }
 0x167   :  { %v839_v40 = vadd.f32 %v838_v27, %v798_v38  ;;  %v801_v41 = vadd.f32 %v1421_v39, %v760_v26 }
 0x169   :  { %v842_v42 = vadd.f32 %v841_v29, %v801_v41  ;;  %v845_v43 = vmax.f32 %v839_v40, 0.0 }
 0x16b   :  { %v846_v44 = vmax.f32 %v842_v42, 0.0 }
 0x16d   :  { %v847_v45 = vpack.c.bf16 %v846_v44, %v845_v43 }
 0x16f   :  { %989 = vmatmul.mubr.bf16.vlgmr.msra.gmra.mrb[8].mxu1 %v847_v45 }
 0x242   :  { %v990_v55 = vpop.f32.mrb[8].mxu1 }
 0x243   :  { %v991_v56 = vadd.f32 %v990_v55, %v869_v53  ;;  %v992_v57 = vpop.f32.mrb[9].mxu1 }
 0x244   :  { %v993_v58 = vadd.f32 %v992_v57, %v873_v54  ;;  %v994_v59 = vpop.f32.mrb[10].mxu1 }
 0x245   :  { %v995_v60 = vadd.f32 %v994_v59, %v869_v53  ;;  %v996_v61 = vpop.f32.mrb[11].mxu1  ;;  %v999_v63 = vmax.f32 %v991_v56, 0.0 }
 0x246   :  { %v997_v62 = vadd.f32 %v996_v61, %v873_v54  ;;  %v1000_v1 = vmax.f32 %v993_v58, 0.0 }
 0x247   :  { %v1001_v0 = vmax.f32 %v995_v60, 0.0 }
 0x248   :  { %v1002_v2 = vmax.f32 %v997_v62, 0.0 }
 0x249   :  { %v1003_v3 = vpack.c.bf16 %v1001_v0, %v999_v63 }
 0x24a   :  { %v1004_v4 = vpack.c.bf16 %v1002_v2, %v1000_v1 }
 0x24c   :  { %1172 = vmatprep.mubr.bf16.mxu0 %v1004_v4 }
 0x24d   :  { %1173 = vmatmul.mubr.bf16.vlgmr.msra.gmra.mrb[8].mxu0 %v1003_v3 }
 0x320   :  { %v1440_v7 = vpop.f32.mrb[8].mxu0 }
 0x321   :  { %v1441_v8 = vpop.f32.mrb[9].mxu0 }
 0x322   :  { %v1442_v9 = vadd.f32 %v1441_v8, %v1440_v7  ;;  %v1443_v10 = vpop.f32.mrb[10].mxu0 }
 0x323   :  { %v1444_v13 = vpop.f32.mrb[11].mxu0 }
 0x324   :  { %v1445_v14 = vadd.f32 %v1444_v13, %v1443_v10  ;;  %v1175_v15 = vadd.f32 %v1442_v9, %v1334_v12 }
 0x326   :  { %v1178_v16 = vadd.f32 %v1445_v14, %v1334_v12 }
 0x328   :  { %v1181_v18 = vpack.c.bf16 %v1178_v16, %v1175_v15  ;;  %v1351_v19 = vpack.c.bf16 %v1178_v16, %v1178_v16 }
 0x32a   :  { %v1190_v20 = vrot.slane %v1181_v18, %v1189_v17  ;;  %v1197_v21 = vrot.slane %v1351_v19, %v1189_v17 }
 0x32c   :  { %v1198_v22 = vcombine.high %v1190_v20, %v1190_v20  ;;  %v1199_v23 = vcombine.high %v1197_v21, %v1197_v21  ;;  %v1206_v24 = vrot.slane %v1190_v20, %v1189_v17  ;;  %v1213_v25 = vrot.slane %v1197_v21, %v1189_v17  ;;  %1352 = vst.sshfl [vmem:[#allocation10] sm:$0x1 pattern:$0x73625140] %v1190_v20 }
 0x32d   :  { %1354 = vst.sshfl [vmem:[#allocation10 + $0x4] sm:$0x1 pattern:$0x73625140] %v1197_v21 }
 0x32e   :  { %v1220_v26 = vrot.slane %v1198_v22, %v1189_v17  ;;  %v1227_v27 = vrot.slane %v1199_v23, %v1189_v17  ;;  %v1228_v28 = vcombine.high %v1206_v24, %v1206_v24  ;;  %v1229_v29 = vcombine.high %v1213_v25, %v1213_v25  ;;  %1353 = vst.sshfl [vmem:[#allocation10 + $0x1] sm:$0x1 pattern:$0x73625140] %v1198_v22 }
 0x32f   :  { %1355 = vst.sshfl [vmem:[#allocation10 + $0x5] sm:$0x1 pattern:$0x73625140] %v1199_v23 }
 0x330   :  { %v1230_v30 = vcombine.high %v1220_v26, %v1220_v26  ;;  %v1231_v31 = vcombine.high %v1227_v27, %v1227_v27  ;;  %1242 = vst [vmem:[#allocation10 + $0x2] sm:$0x1] %v1228_v28  ;;  %1246 = vst [vmem:[#allocation10 + $0x6] sm:$0x1] %v1229_v29 }
 0x332   :  { %1243 = vst [vmem:[#allocation10 + $0x3] sm:$0x1] %v1230_v30  ;;  %1247 = vst [vmem:[#allocation10 + $0x7] sm:$0x1] %v1231_v31 }
 0x333   :  { %1252 = vsyncadd [#allocation4], 112  ;;  %s1716_s6 = smov [#allocation10]  }
 0x334   :  { %s1253_s9 = sshll.u32 %s1716_s6, 4  ;;  %s1254_s9 = int_to_ptr.vmem [resolvable:$true] %s1253_s9 }
 0x335   :  { %s1671_s10 = scalar_lea.vmem %s1254_s9, 16  ;;  %s1675_s13 = scalar_lea.vmem %s1254_s9, 128 }
 0x336   :  { %p1672_p4 = scmp.ne.s32.totalorder %s1254_s9, %s1671_s10  ;;  %p1676_p5 = scmp.lt.s32.totalorder %s1254_s9, %s1254_s9 }
 0x337   :  { %p1677_p6 = scmp.lt.s32.totalorder %s1675_s13, %s1671_s10 }
 0x339   :  { %p1678_p7 = por %p1677_p6, %p1676_p5 }
 0x33b   :  { %p1679_p8 = pnand %p1678_p7, %p1672_p4 }
 0x33d   :  { %1682 = shalt.err (!%p1679_p8)
}
 0x33e   :  { %s1683_s17 = scalar_lea.hbm %s1865_s7, 16 }
 0x33f   :  { %p1684_p9 = scmp.ne.s32.totalorder %s1865_s7, %s1683_s17  ;;  %p1687_p10 = scmp.lt.u32.totalorder %s1683_s17, %s1865_s7 }
 0x341   :  { %p1689_p11 = pnand %p1687_p10, %p1684_p9 }
 0x343   :  { %1692 = shalt.err (!%p1689_p11)
}
 0x344   :  { %s1717_s20 = smov 16   ;;  %s1718_s21 = smov 1  }
 0x345   :  { %1259 = dma.vmem_to_hbm [thread:$0]  %s1254_s9, 16, %s1865_s7, [#allocation4], %s1717_s20, %s1717_s20, %s1718_s21  }
 0x346   :  { %1699 = dma.done.wait [#allocation4], 128  }
 0x347   :  { %1700 = vsyncadd [#allocation4], 4294967168 }
 0x348   :  { %1263 = vsyncpa [#allocation3], 1 }
 0x349   :  { %1264 = vsyncpa [#allocation6], 1 }
 0x34a   :  { %1265 = vsyncpa [#allocation9], 1 }
 0x34b   :  { %1266 = vsyncpa [#allocation4], 1 }

</bundles_post_ra>
